<compile_context>
chip_gen: v5e
topology: v5e:2x2
jax: 0.10.0
libtpu: 0.0.40
codegen_flags: <defaults>
</compile_context>

<pallas_src>
import functools
import math

import jax
import jax.numpy as jnp
from jax.experimental import pallas as pl
from jax.experimental.pallas import tpu as pltpu

EPS = 1e-6


# ----------------------------------------------------------------------------
# Kernel body
# ----------------------------------------------------------------------------
def _rmsnorm_kernel(x_ref, w_ref, o_ref, *, eps):
    # x_ref: (TILE_ROWS, H), w_ref: (1, H) f32, o_ref: (TILE_ROWS, H)
    x = x_ref[...]
    x_f32 = x.astype(jnp.float32)
    variance = jnp.mean(x_f32 * x_f32, axis=-1, keepdims=True)  # XLU reduce
    inv = jax.lax.rsqrt(variance + eps)                          # EUP
    # torch semantics: cast back to the input dtype BEFORE the weight multiply.
    normed = (x_f32 * inv).astype(x.dtype)
    # w_ref is already f32 (pre-cast host-side); the multiply promotes normed.
    o_ref[...] = (w_ref[...] * normed).astype(o_ref.dtype)


# ----------------------------------------------------------------------------
# Tile / VMEM sizing helpers
# ----------------------------------------------------------------------------
def _sublane_multiple(dtype):
    # 32-bit packs 8 rows/vreg, 16-bit packs 16, 8-bit packs 32.
    bits = jnp.dtype(dtype).itemsize * 8
    return max(8, 256 // bits)


def _chip_topology():
    """Return (per-core VMEM bytes, inferred TensorCores per chip)."""
    try:
        vmem = int(pltpu.get_tpu_info().vmem_capacity_bytes)
    except Exception:
        vmem = 64 * 1024 * 1024  # conservative fallback (v7x per-TC VMEM)
    # TODO(synk): query the TensorCore count directly once exposed; for now
    # 64 MiB/TC VMEM implies v7x (2 TCs/chip), 128 MiB implies v5e/v6e (1 TC).
    num_cores = 2 if vmem <= (64 << 20) else 1
    return vmem, num_cores


def _pick_tile_rows(rows, hidden, in_dtype, num_cores, target_tile_bytes):
    """Byte-targeted row-tile size, rounded to the dtype sublane packing."""
    sub = _sublane_multiple(in_dtype)
    row_bytes = hidden * jnp.dtype(in_dtype).itemsize
    # Size by bytes so small hidden dims still get large, overhead-amortizing
    # tiles, and huge hidden dims don't blow VMEM.
    tile = max(sub, (target_tile_bytes // max(row_bytes, 1)) // sub * sub)
    padded_rows = pl.cdiv(rows, sub) * sub
    tile = min(tile, padded_rows)
    # On dual-TC chips, prefer >= 2 grid steps per core so each core keeps a
    # double-buffered pipeline -- but never shrink a step below ~1 MiB of
    # input bytes (step overhead would dominate).
    if num_cores >= 2:
        min_steps = 2 * num_cores
        if pl.cdiv(rows, tile) < min_steps:
            cand = max(sub, pl.cdiv(pl.cdiv(padded_rows, min_steps), sub) * sub)
            if cand * row_bytes >= (1 << 20):
                tile = min(tile, cand)
    return tile


# ----------------------------------------------------------------------------
# Non-lane-dense fallback (hidden not a multiple of 128)
# ----------------------------------------------------------------------------
def _rmsnorm_xla(x, weight, eps, out_dtype):
    x_f32 = x.astype(jnp.float32)
    variance = jnp.mean(x_f32 * x_f32, axis=-1, keepdims=True)
    normed = (x_f32 * jax.lax.rsqrt(variance + eps)).astype(x.dtype)
    return (weight.astype(jnp.float32) * normed).astype(out_dtype)


# ----------------------------------------------------------------------------
# Public wrapper
# ----------------------------------------------------------------------------
def rmsnorm_pallas(x, weight, *, eps=EPS, out_dtype=None, tile_rows=None):
    """RMSNorm over the last axis. x: (..., hidden); weight: (hidden,).

    out_dtype defaults to the torch promotion (f32 weight * x -> f32).  For
    bf16 activations pass out_dtype=x.dtype to halve writeback bytes.
    """
    orig_shape = x.shape
    hidden = orig_shape[-1]
    if out_dtype is None:
        out_dtype = jnp.promote_types(weight.dtype, x.dtype)

    if hidden % 128 != 0:
        # <100% lane utilization + masked partial stores: plain XLA is faster.
        return _rmsnorm_xla(x, weight, eps, out_dtype)

    rows = math.prod(orig_shape[:-1]) if orig_shape[:-1] else 1
    x2d = x.reshape(rows, hidden)
    w2d = weight.reshape(1, hidden).astype(jnp.float32)  # pre-cast once

    vmem_bytes, num_cores = _chip_topology()
    in_b = jnp.dtype(x.dtype).itemsize
    out_b = jnp.dtype(out_dtype).itemsize

    if tile_rows is None:
        target_tile_bytes = (4 << 20) if vmem_bytes <= (64 << 20) else (8 << 20)
        tile_rows = _pick_tile_rows(rows, hidden, x.dtype, num_cores,
                                    target_tile_bytes)
    sub = _sublane_multiple(x.dtype)
    assert tile_rows % sub == 0, (tile_rows, sub)

    n_tiles = pl.cdiv(rows, tile_rows)

    # Truthful VMEM budget: double-buffered in+out tiles + f32 weight + scratch.
    footprint = 2 * tile_rows * hidden * (in_b + out_b) + 4 * hidden + (4 << 20)
    cap = min(vmem_bytes - (8 << 20), 112 << 20)  # real headroom (<=56 MiB v7x)
    vmem_limit = int(max(16 << 20, min(footprint, cap)))

    out2d = pl.pallas_call(
        functools.partial(_rmsnorm_kernel, eps=eps),
        out_shape=jax.ShapeDtypeStruct((rows, hidden), out_dtype),
        grid_spec=pltpu.PrefetchScalarGridSpec(
            num_scalar_prefetch=0,
            grid=(n_tiles,),
            in_specs=[
                pl.BlockSpec((tile_rows, hidden), lambda i: (i, 0)),
                pl.BlockSpec((1, hidden), lambda i: (0, 0)),
            ],
            out_specs=pl.BlockSpec((tile_rows, hidden), lambda i: (i, 0)),
        ),
        compiler_params=pltpu.CompilerParams(
            dimension_semantics=("parallel",),
            vmem_limit_bytes=vmem_limit,
        ),
    )(x2d, w2d)

    return out2d.reshape(orig_shape)


# ----------------------------------------------------------------------------
# Pure-JAX reference (matches the PyTorch module's forward)
# ----------------------------------------------------------------------------
def rmsnorm_ref(x, weight, eps=EPS):
    x_f32 = x.astype(jnp.float32)
    variance = jnp.mean(x_f32 * x_f32, axis=-1, keepdims=True)
    normed = (x_f32 * jax.lax.rsqrt(variance + eps)).astype(x.dtype)
    return (weight.astype(jnp.float32) * normed).astype(
        jnp.promote_types(weight.dtype, x.dtype)
    )


if __name__ == "__main__":
    key = jax.random.PRNGKey(0)
    k1, k2, k3, kw = jax.random.split(key, 4)

    # Case 1: lane-dense hidden, f32, row count (3*7=21) not a multiple of the
    # tile -> exercises Pallas' masked partial last block (no host pad/slice).
    b1, s1, h1 = 3, 7, 256
    x1 = jax.random.normal(k1, (b1, s1, h1), dtype=jnp.float32)
    w1 = jnp.ones((h1,), dtype=jnp.float32)  # nn.Parameter(torch.ones(H))
    out1 = jax.block_until_ready(rmsnorm_pallas(x1, w1))
    ref1 = rmsnorm_ref(x1, w1)
    assert out1.shape == ref1.shape, (out1.shape, ref1.shape)
    assert out1.dtype == ref1.dtype, (out1.dtype, ref1.dtype)
    assert jnp.allclose(out1, ref1, atol=1e-5, rtol=1e-5), "f32 mismatch"

    # Case 2: bf16 input, non-trivial weight, bf16 output opt-in (halves
    # writeback bytes on this mem-bound kernel).
    b2, s2, h2 = 2, 8, 256
    x2 = jax.random.normal(k2, (b2, s2, h2), dtype=jnp.bfloat16)
    w2 = jax.random.uniform(kw, (h2,), dtype=jnp.float32, minval=0.5, maxval=1.5)
    out2 = jax.block_until_ready(rmsnorm_pallas(x2, w2, out_dtype=jnp.bfloat16))
    ref2 = rmsnorm_ref(x2, w2).astype(jnp.bfloat16)
    assert out2.shape == ref2.shape, (out2.shape, ref2.shape)
    assert out2.dtype == ref2.dtype, (out2.dtype, ref2.dtype)
    assert jnp.allclose(out2.astype(jnp.float32), ref2.astype(jnp.float32),
                        atol=2e-2, rtol=2e-2), "bf16 mismatch"

    # Case 3: hidden=32 (the module's tiny example) -> non-lane-dense fallback.
    b3, s3, h3 = 2, 8, 32
    x3 = jax.random.normal(k3, (b3, s3, h3), dtype=jnp.float32)
    w3 = jnp.ones((h3,), dtype=jnp.float32)
    out3 = jax.block_until_ready(rmsnorm_pallas(x3, w3))
    ref3 = rmsnorm_ref(x3, w3)
    assert out3.shape == ref3.shape and out3.dtype == ref3.dtype
    assert jnp.allclose(out3, ref3, atol=1e-5, rtol=1e-5), "fallback mismatch"

    print("KERNEL_OK")
</pallas_src>

<mosaic_0001>
module attributes {stable_mosaic.version = 11 : i64} {
  func.func @_rmsnorm_kernel(%arg0: i32, %arg1: memref<24x256xf32, #tpu.memory_space<vmem>>, %arg2: memref<1x256xf32, #tpu.memory_space<vmem>>, %arg3: memref<24x256xf32, #tpu.memory_space<vmem>>) attributes {dimension_semantics = [#tpu.dimension_semantics<parallel>], iteration_bounds = array<i64: 1>, scalar_prefetch = 0 : i64, scratch_operands = 0 : i64, tpu.core_type = #tpu.core_type<tc>, window_params = [{transform_indices = @transform_0, window_bounds = array<i64: 24, 256>}, {pipeline_mode = #tpu.pipeline_mode<synchronous>, transform_indices = @transform_1, window_bounds = array<i64: 1, 256>}, {transform_indices = @transform_2, window_bounds = array<i64: 24, 256>}]} {
    %c0 = arith.constant 0 : index
    %c0_0 = arith.constant 0 : index
    %0 = vector.load %arg1[%c0, %c0_0] : memref<24x256xf32, #tpu.memory_space<vmem>>, vector<24x256xf32>
    %1 = arith.mulf %0, %0 : vector<24x256xf32>
    %cst = arith.constant dense<0.000000e+00> : vector<24xf32>
    %2 = vector.multi_reduction <add>, %1, %cst [1] : vector<24x256xf32> to vector<24xf32>
    %3 = vector.shape_cast %2 : vector<24xf32> to vector<24x1xf32>
    %cst_1 = arith.constant 2.560000e+02 : f32
    %4 = vector.broadcast %cst_1 : f32 to vector<24x1xf32>
    %5 = arith.divf %3, %4 : vector<24x1xf32>
    %cst_2 = arith.constant 9.99999997E-7 : f32
    %6 = vector.broadcast %cst_2 : f32 to vector<24x1xf32>
    %7 = arith.addf %5, %6 : vector<24x1xf32>
    %8 = math.rsqrt %7 : vector<24x1xf32>
    %9 = vector.broadcast %8 : vector<24x1xf32> to vector<24x256xf32>
    %10 = arith.mulf %0, %9 : vector<24x256xf32>
    %c0_3 = arith.constant 0 : index
    %c0_4 = arith.constant 0 : index
    %11 = vector.load %arg2[%c0_3, %c0_4] : memref<1x256xf32, #tpu.memory_space<vmem>>, vector<1x256xf32>
    %12 = vector.broadcast %11 : vector<1x256xf32> to vector<24x256xf32>
    %13 = arith.mulf %12, %10 : vector<24x256xf32>
    %c0_5 = arith.constant 0 : index
    %c0_6 = arith.constant 0 : index
    %14 = vector.load %arg3[%c0_5, %c0_6] : memref<24x256xf32, #tpu.memory_space<vmem>>, vector<24x256xf32>
    tpu.vector_store %arg3[%c0_5, %c0_6], %13 {strides = array<i32>} : memref<24x256xf32, #tpu.memory_space<vmem>>, vector<24x256xf32>,
    return
  }
  func.func @transform_0(%arg0: i32) -> (i32, i32) {
    %c0_i32 = arith.constant 0 : i32
    %c0_i32_0 = arith.constant 0 : i32
    return %arg0, %c0_i32 : i32, i32
  }
  func.func @transform_1(%arg0: i32) -> (i32, i32) {
    %c0_i32 = arith.constant 0 : i32
    %c0_i32_0 = arith.constant 0 : i32
    %c0_i32_1 = arith.constant 0 : i32
    return %c0_i32, %c0_i32_0 : i32, i32
  }
  func.func @transform_2(%arg0: i32) -> (i32, i32) {
    %c0_i32 = arith.constant 0 : i32
    %c0_i32_0 = arith.constant 0 : i32
    return %arg0, %c0_i32 : i32, i32
  }
}

</mosaic_0001>

<bundles_post_ra>
// kernel: tpu_custom_call.1
= control target key start
LH: loop header
LB: loop body
LE: loop exit
PB: predicated region body
PF: predicated region fallthrough
CT: control target
= control target key end

     0   :  { %7 = vsyncpa [#allocation3], 0  ;;  %s308_s0 = inlined_call_operand.hbm [shape: f32[21,256], index: 0, kind: input, shape index: {}]   ;;  %s309_s1 = inlined_call_operand.hbm [shape: f32[1,256], index: 1, kind: input, shape index: {}]   ;;  %s310_s2 = inlined_call_operand.hbm [shape: f32[21,256], index: 2, kind: output, shape index: {}]  }
   0x1   :  { %8 = vsyncpa [#allocation6], 0 }
   0x2   :  { %9 = vsyncpa [#allocation4], 0  ;;  %s14_s11 = sshll.u32 %s308_s0, 4  ;;  %s242_s12 = smov [#allocation2]   ;;  %s15_s11 = int_to_ptr.hbm [resolvable:$true] %s14_s11 }
   0x3   :  { %s16_s13 = sshll.u32 %s242_s12, 4  ;;  %s28_s16 = sshll.u32 %s309_s1, 4  ;;  %s17_s13 = int_to_ptr.vmem [resolvable:$true] %s16_s13  ;;  %s29_s16 = int_to_ptr.hbm [resolvable:$true] %s28_s16 }
   0x4   :  { %s243_s17 = smov 256   ;;  %s244_s18 = smov 16  }
   0x5   :  { %22 = dma.hbm_to_vmem [thread:$0]  %s15_s11, 768, %s17_s13, [#allocation3], %s243_s17, %s243_s17, %s244_s18  }
   0x6   :  { %s245_s19 = smov [#allocation5]  }
   0x7   :  { %s30_s20 = sshll.u32 %s245_s19, 4  ;;  %s31_s20 = int_to_ptr.vmem [resolvable:$true] %s30_s20 }
   0x8   :  { %33 = dma.hbm_to_vmem [thread:$0]  %s29_s16, 32, %s31_s20, [#allocation6]  }
   0x9   :  { %236 = dma.done.wait [#allocation3], 768  }
   0xa   :  { %237 = vsyncadd [#allocation3], 4294966528 }
   0xb   :  { %238 = dma.done.wait [#allocation6], 32  }
   0xc   :  { %239 = vsyncadd [#allocation6], 4294967264  ;;  %v272_v0 = vld [vmem:[#allocation2 + $0x20] sm:$0xff]  ;;  %v274_v1 = vld [vmem:[#allocation2 + $0x28] sm:$0xff]  ;;  %v246_v15 = vmov 256.0   ;;  %s247_s0 = smov [#allocation7]  }
   0xd   :  { %v276_v2 = vld [vmem:[#allocation2] sm:$0xff]  ;;  %v52_v3 = vmul.f32 %v272_v0, %v272_v0  ;;  %v53_v4 = vmul.f32 %v274_v1, %v274_v1  ;;  %v282_v5 = vld [vmem:[#allocation2 + $0x8] sm:$0xff]  ;;  %v288_v9 = vld [vmem:[#allocation2 + $0x10] sm:$0xff]  ;;  %156 = vrcp.f32 %v246_v15  ;;  %s134_s1 = sshll.u32 %s247_s0, 4  ;;  %s136_s23 = sshll.u32 %s310_s2, 4  ;;  %s135_s1 = int_to_ptr.vmem [resolvable:$true] %s134_s1  ;;  %s137_s23 = int_to_ptr.hbm [resolvable:$true] %s136_s23 }
   0xe   :  { %v48_v6 = vmul.f32 %v276_v2, %v276_v2  ;;  %v49_v7 = vmul.f32 %v282_v5, %v282_v5  ;;  %v290_v10 = vld [vmem:[#allocation2 + $0x18] sm:$0xff]  ;;  %v50_v12 = vmul.f32 %v288_v9, %v288_v9  ;;  %v112_v38 = vld [vmem:[#allocation5] sm:$0x3] }
   0xf   :  { %v60_v8 = vadd.f32 %v53_v4, %v52_v3  ;;  %v51_v13 = vmul.f32 %v290_v10, %v290_v10  ;;  %v114_v43 = vperm.slane %v112_v38, 0  ;;  %v115_v45 = vperm.slane %v112_v38, 1 }
  0x10   :  { %v54_v11 = vadd.f32 %v49_v7, %v48_v6 }
  0x11   :  { %61 = vadd.xlane.f32.xlu1 %v60_v8  ;;  %v57_v14 = vadd.f32 %v51_v13, %v50_v12 }
  0x12   :  { %55 = vadd.xlane.f32.xlu0 %v54_v11 }
  0x13   :  { %v157_v16 = vpop.eup %156 }
  0x14   :  { %v64_v17 = vmul.f32 256.0, %v157_v16  ;;  %vm68_vm0 = vweird.f32 %v157_v16 }
  0x16   :  { %v65_v18 = vsub.f32 1.0, %v64_v17 }
  0x18   :  { %v66_v19 = vmul.f32 %v157_v16, %v65_v18 }
  0x1a   :  { %58 = vadd.xlane.f32.xlu0 %v57_v14  ;;  %v67_v20 = vadd.f32 %v157_v16, %v66_v19 }
  0x1c   :  { %v69_v21 = vsel %vm68_vm0, %v157_v16, %v67_v20 }
  0x84   :  { %v62_v22 = vpop.xlane.xlu1 %61 }
  0x85   :  { %v72_v23 = vmul.f32 %v69_v21, %v62_v22  ;;  %v56_v24 = vpop.xlane.xlu0 %55 }
  0x86   :  { %v70_v25 = vmul.f32 %v69_v21, %v56_v24 }
  0x87   :  { %v75_v26 = vadd.f32 1e-06, %v72_v23 }
  0x88   :  { %v73_v27 = vadd.f32 1e-06, %v70_v25 }
  0x89   :  { %158 = vrsqrt.f32 %v75_v26  ;;  %vm102_vm1 = vweird.f32 %v75_v26 }
  0x8a   :  { %160 = vrsqrt.f32 %v73_v27  ;;  %vm82_vm5 = vweird.f32 %v73_v27 }
  0x8d   :  { %v59_v28 = vpop.xlane.xlu0 %58 }
  0x8e   :  { %v71_v29 = vmul.f32 %v69_v21, %v59_v28 }
  0x8f   :  { %v159_v30 = vpop.eup %158 }
  0x90   :  { %v161_v31 = vpop.eup %160  ;;  %v97_v32 = vmul.f32 %v159_v30, %v75_v26  ;;  %v74_v33 = vadd.f32 1e-06, %v71_v29  ;;  %vm103_vm2 = vweird.f32 %v159_v30 }
  0x91   :  { %v77_v34 = vmul.f32 %v161_v31, %v73_v27  ;;  %vm83_vm3 = vweird.f32 %v161_v31  ;;  %vm104_vm4 = vmor %vm102_vm1, %vm103_vm2 }
  0x92   :  { %v98_v35 = vmul.f32 %v159_v30, %v97_v32  ;;  %162 = vrsqrt.f32 %v74_v33  ;;  %vm84_vm6 = vmor %vm82_vm5, %vm83_vm3  ;;  %vm92_vm8 = vweird.f32 %v74_v33 }
  0x93   :  { %v78_v36 = vmul.f32 %v161_v31, %v77_v34 }
  0x94   :  { %v99_v37 = vmul.f32 0.5, %v98_v35 }
  0x95   :  { %v79_v39 = vmul.f32 0.5, %v78_v36 }
  0x96   :  { %v100_v40 = vsub.f32 1.5, %v99_v37 }
  0x97   :  { %v80_v41 = vsub.f32 1.5, %v79_v39 }
  0x98   :  { %v163_v42 = vpop.eup %162  ;;  %v101_v44 = vmul.f32 %v159_v30, %v100_v40 }
  0x99   :  { %v81_v46 = vmul.f32 %v161_v31, %v80_v41  ;;  %v87_v47 = vmul.f32 %v163_v42, %v74_v33  ;;  %vm93_vm7 = vweird.f32 %v163_v42 }
  0x9a   :  { %v105_v48 = vsel %vm104_vm4, %v159_v30, %v101_v44  ;;  %vm94_vm9 = vmor %vm92_vm8, %vm93_vm7 }
  0x9b   :  { %v110_v49 = vmul.f32 %v105_v48, %v272_v0  ;;  %v111_v50 = vmul.f32 %v105_v48, %v274_v1  ;;  %v85_v51 = vsel %vm84_vm6, %v161_v31, %v81_v46  ;;  %v88_v52 = vmul.f32 %v163_v42, %v87_v47 }
  0x9c   :  { %v106_v53 = vmul.f32 %v85_v51, %v276_v2  ;;  %v107_v54 = vmul.f32 %v85_v51, %v282_v5 }
  0x9d   :  { %v122_v55 = vmul.f32 %v114_v43, %v110_v49  ;;  %v123_v56 = vmul.f32 %v115_v45, %v111_v50  ;;  %v89_v57 = vmul.f32 0.5, %v88_v52 }
  0x9e   :  { %v118_v58 = vmul.f32 %v114_v43, %v106_v53  ;;  %v119_v59 = vmul.f32 %v115_v45, %v107_v54 }
  0x9f   :  { %128 = vst [vmem:[#allocation7 + $0x20] sm:$0xff] %v122_v55  ;;  %v90_v60 = vsub.f32 1.5, %v89_v57 }
  0xa0   :  { %129 = vst [vmem:[#allocation7 + $0x28] sm:$0xff] %v123_v56 }
  0xa1   :  { %124 = vst [vmem:[#allocation7] sm:$0xff] %v118_v58  ;;  %v91_v61 = vmul.f32 %v163_v42, %v90_v60 }
  0xa2   :  { %125 = vst [vmem:[#allocation7 + $0x8] sm:$0xff] %v119_v59 }
  0xa3   :  { %v95_v62 = vsel %vm94_vm9, %v163_v42, %v91_v61 }
  0xa4   :  { %v108_v63 = vmul.f32 %v95_v62, %v288_v9  ;;  %v109_v0 = vmul.f32 %v95_v62, %v290_v10 }
  0xa6   :  { %v120_v1 = vmul.f32 %v114_v43, %v108_v63  ;;  %v121_v2 = vmul.f32 %v115_v45, %v109_v0 }
  0xa8   :  { %126 = vst [vmem:[#allocation7 + $0x10] sm:$0xff] %v120_v1 }
  0xa9   :  { %127 = vst [vmem:[#allocation7 + $0x18] sm:$0xff] %v121_v2 }
  0xaa   :  { %142 = dma.vmem_to_hbm [thread:$0]  %s135_s1, 768, %s137_s23, [#allocation4], %s243_s17, %s243_s17, %s244_s18  }
  0xab   :  { %240 = dma.done.wait [#allocation4], 768  }
  0xac   :  { %241 = vsyncadd [#allocation4], 4294966528 }
  0xad   :  { %147 = vsyncpa [#allocation3], 1 }
  0xae   :  { %148 = vsyncpa [#allocation6], 1 }
  0xaf   :  { %149 = vsyncpa [#allocation4], 1 }

</bundles_post_ra>
